<compile_context>
chip_gen: v6e
topology: v6e:2x2x1
jax: 0.10.0
libtpu: 0.0.40
codegen_flags: <defaults>
</compile_context>

<pallas_src>
import jax
import jax.numpy as jnp
from jax import lax
from jax.experimental import pallas as pl
from jax.experimental.pallas import tpu as pltpu


def _round_up(a, b):
    return ((a + b - 1) // b) * b


def _silu(x):
    # exp + reciprocal both issue on the EUP slot (otherwise idle here).
    return x * pl.reciprocal(1.0 + jnp.exp(-x), approx=True)


def node_model_kernel(dest_ref, ea_ref, xf_ref,
                      w1xf_ref, w1a_ref, b1_ref,
                      w2_ref, b2_ref, w3_ref, b3_ref,
                      out_ref, acc_ref):
    n_tile, d_plus_1 = acc_ref.shape
    d = d_plus_1 - 1
    e_tile = dest_ref.shape[1]
    e = pl.program_id(1)
    n_e = pl.num_programs(1)

    @pl.when(e == 0)
    def _init():
        acc_ref[...] = jnp.zeros_like(acc_ref)

    # ---- scatter-sum + counts for this (node tile, edge tile) pair ----------
    node_base = pl.program_id(0) * n_tile
    rows = lax.broadcasted_iota(jnp.int32, (n_tile, e_tile), 0) + node_base
    # dest is lane-dense [1, E_tile]; padded (-1) / out-of-range ids never match
    # (same drop semantics as the JAX .at[].add reference).
    onehot = (rows == dest_ref[...]).astype(jnp.bfloat16)        # [n_tile, e_tile]
    # edge_attr carries a trailing ones column -> sums AND counts in one matmul
    acc_ref[...] += jnp.dot(onehot, ea_ref[...],
                            preferred_element_type=jnp.float32)  # [n_tile, d+1]

    # ---- finalize: scatter_mean + 3-layer MLP --------------------------------
    @pl.when(e == n_e - 1)
    def _finalize():
        acc = acc_ref[...]
        sums = acc[:, :d]
        counts = acc[:, d:]
        inv = pl.reciprocal(jnp.maximum(counts, 1.0), approx=True)
        agg = (sums * inv).astype(jnp.bfloat16)                  # scatter_mean

        # cat([x, agg, f]) @ W1 + b1   (split-weight form, [x|f] pre-merged)
        h = (jnp.dot(xf_ref[...], w1xf_ref[...], preferred_element_type=jnp.float32)
             + jnp.dot(agg, w1a_ref[...], preferred_element_type=jnp.float32)
             + b1_ref[...])
        h = _silu(h)

        h = jnp.dot(h.astype(jnp.bfloat16), w2_ref[...],
                    preferred_element_type=jnp.float32) + b2_ref[...]
        h = _silu(h)

        out = jnp.dot(h.astype(jnp.bfloat16), w3_ref[...],
                      preferred_element_type=jnp.float32) + b3_ref[...]
        out_ref[...] = out.astype(out_ref.dtype)


def node_model_forward(x, edge_index, edge_attr, f, params, *,
                       n_tile=None, e_tile=None):
    """x: [N, Dh], edge_index: [2, E] int, edge_attr: [E, Dh], f: [N, Df]."""
    N, D = x.shape
    E = edge_attr.shape[0]
    Df = f.shape[1]
    (w1, b1), (w2, b2), (w3, b3) = params
    H = w2.shape[0]
    out_dim = w3.shape[1]

    # Split W1 rows to match cat([x, agg, f]) ordering; merge the x and f parts
    # so the kernel does one K=(D+Df) matmul instead of an extra K=Df dot.
    w1x, w1a, w1f = w1[:D], w1[D:2 * D], w1[2 * D:]
    w1xf = jnp.concatenate([w1x, w1f], axis=0)                   # [D+Df, H]

    # ---- tile sizes (sublane multiple of 8; edge tile lane-dense mult of 128)
    if n_tile is None:
        n_tile = min(256, _round_up(N, 8))
    if e_tile is None:
        e_tile = min(512, _round_up(E, 128))
    n_tile = _round_up(n_tile, 8)
    e_tile = _round_up(e_tile, 128)
    Np = _round_up(N, n_tile)
    Ep = _round_up(E, e_tile)

    # ---- pad + lay out inputs ------------------------------------------------
    dest = edge_index[1].astype(jnp.int32)
    dest = jnp.pad(dest, (0, Ep - E), constant_values=-1).reshape(1, Ep)  # lane-dense
    ea_aug = jnp.concatenate([edge_attr, jnp.ones((E, 1), edge_attr.dtype)], axis=1)
    ea_aug = jnp.pad(ea_aug, ((0, Ep - E), (0, 0))).astype(jnp.bfloat16)  # [Ep, D+1]
    xf = jnp.concatenate([x, f], axis=1)
    xf = jnp.pad(xf, ((0, Np - N), (0, 0))).astype(jnp.bfloat16)          # [Np, D+Df]

    w1xf_b = w1xf.astype(jnp.bfloat16)
    w1a_b = w1a.astype(jnp.bfloat16)
    w2_b = w2.astype(jnp.bfloat16)
    w3_b = w3.astype(jnp.bfloat16)
    b1r = b1.reshape(1, -1).astype(jnp.float32)
    b2r = b2.reshape(1, -1).astype(jnp.float32)
    b3r = b3.reshape(1, -1).astype(jnp.float32)

    grid = (Np // n_tile, Ep // e_tile)

    out = pl.pallas_call(
        node_model_kernel,
        out_shape=jax.ShapeDtypeStruct((Np, out_dim), jnp.float32),
        grid_spec=pltpu.PrefetchScalarGridSpec(
            num_scalar_prefetch=0,
            grid=grid,
            in_specs=[
                pl.BlockSpec((1, e_tile), lambda i, e: (0, e)),        # dest [1, E]
                pl.BlockSpec((e_tile, D + 1), lambda i, e: (e, 0)),    # edge_attr|1
                pl.BlockSpec((n_tile, D + Df), lambda i, e: (i, 0)),   # [x|f]
                pl.BlockSpec((D + Df, H), lambda i, e: (0, 0)),        # W1_[x,f]
                pl.BlockSpec((D, H), lambda i, e: (0, 0)),             # W1_agg
                pl.BlockSpec((1, H), lambda i, e: (0, 0)),             # b1
                pl.BlockSpec((H, H), lambda i, e: (0, 0)),             # W2
                pl.BlockSpec((1, H), lambda i, e: (0, 0)),             # b2
                pl.BlockSpec((H, out_dim), lambda i, e: (0, 0)),       # W3
                pl.BlockSpec((1, out_dim), lambda i, e: (0, 0)),       # b3
            ],
            out_specs=pl.BlockSpec((n_tile, out_dim), lambda i, e: (i, 0)),
            scratch_shapes=[pltpu.VMEM((n_tile, D + 1), jnp.float32)],  # sums|counts
        ),
        compiler_params=pltpu.CompilerParams(
            # node axis shards across TCs (2x on v7x); edge axis is the reduction
            dimension_semantics=("parallel", "arbitrary"),
            # above v5e's 16 MiB scoped default, below v7x's 64 MiB physical
            vmem_limit_bytes=48 * 1024 * 1024,
        ),
    )(dest, ea_aug, xf, w1xf_b, w1a_b, b1r, w2_b, b2r, w3_b, b3r)

    return out[:N]


def _torch_linear_init(key, fan_in, fan_out):
    # deterministic stand-in for nn.Linear default init: U(-1/sqrt(fan_in), ...)
    kw, kb = jax.random.split(key)
    bound = 1.0 / jnp.sqrt(fan_in)
    w = jax.random.uniform(kw, (fan_in, fan_out), jnp.float32, -bound, bound)
    b = jax.random.uniform(kb, (fan_out,), jnp.float32, -bound, bound)
    return w, b


def _reference(x, edge_index, edge_attr, f, params):
    # pure-JAX f32 reference of the PyTorch forward (f is not None branch)
    N = x.shape[0]
    dest = edge_index[1]
    sums = jnp.zeros((N, edge_attr.shape[1]), jnp.float32).at[dest].add(edge_attr)
    cnt = jnp.zeros((N,), jnp.float32).at[dest].add(1.0)
    agg = sums / jnp.maximum(cnt, 1.0)[:, None]
    h = jnp.concatenate([x, agg, f], axis=1)
    (w1, b1), (w2, b2), (w3, b3) = params
    h = jax.nn.silu(h @ w1 + b1)
    h = jax.nn.silu(h @ w2 + b2)
    return h @ w3 + b3


if __name__ == "__main__":
    # NodeModel with args.n_hidden = 2, args.dim_hidden = 32, dims={'f': 4, 'g': 0}
    n_hidden, dim_hidden, dim_f = 2, 32, 4
    N, E = 40, 200

    key = jax.random.PRNGKey(0)
    kx, kea, kei, kf, k1, k2, k3 = jax.random.split(key, 7)

    x = jax.random.normal(kx, (N, dim_hidden), jnp.float32)
    edge_attr = jax.random.normal(kea, (E, dim_hidden), jnp.float32)
    edge_index = jax.random.randint(kei, (2, E), 0, N, jnp.int32)
    f = jax.random.normal(kf, (N, dim_f), jnp.float32)

    # MLP layer_vec = [2*dim_hidden + dims['f'] + dims['g']] + n_hidden*[dh] + [dh]
    in_dim = 2 * dim_hidden + dim_f
    params = (
        _torch_linear_init(k1, in_dim, dim_hidden),
        _torch_linear_init(k2, dim_hidden, dim_hidden),
        _torch_linear_init(k3, dim_hidden, dim_hidden),
    )

    # Small tiles so the test exercises a real (node, edge) grid: grid = (3, 2)
    # with padded rows/edges (Np=48, Ep=256) exercising the masking paths.
    out = node_model_forward(x, edge_index, edge_attr, f, params,
                             n_tile=16, e_tile=128)
    out = jax.block_until_ready(out)

    ref = _reference(x, edge_index, edge_attr, f, params)
    assert out.shape == (N, dim_hidden)
    max_err = jnp.max(jnp.abs(out - ref))
    # bf16 MXU inputs + approx reciprocals -> bf16-level tolerance vs f32 ref
    assert jnp.allclose(out, ref, atol=5e-2, rtol=5e-2), (
        f"mismatch vs reference (max abs err = {max_err})")
    print("KERNEL_OK")
</pallas_src>

<mosaic_0001>
module attributes {stable_mosaic.version = 11 : i64} {
  func.func @node_model_kernel(%arg0: i32, %arg1: i32, %arg2: memref<1x128xi32, #tpu.memory_space<vmem>>, %arg3: memref<128x33xbf16, #tpu.memory_space<vmem>>, %arg4: memref<16x36xbf16, #tpu.memory_space<vmem>>, %arg5: memref<36x32xbf16, #tpu.memory_space<vmem>>, %arg6: memref<32x32xbf16, #tpu.memory_space<vmem>>, %arg7: memref<1x32xf32, #tpu.memory_space<vmem>>, %arg8: memref<32x32xbf16, #tpu.memory_space<vmem>>, %arg9: memref<1x32xf32, #tpu.memory_space<vmem>>, %arg10: memref<32x32xbf16, #tpu.memory_space<vmem>>, %arg11: memref<1x32xf32, #tpu.memory_space<vmem>>, %arg12: memref<16x32xf32, #tpu.memory_space<vmem>>, %arg13: memref<16x33xf32, #tpu.memory_space<vmem>>) attributes {dimension_semantics = [#tpu.dimension_semantics<parallel>, #tpu.dimension_semantics<arbitrary>], iteration_bounds = array<i64: 3, 2>, scalar_prefetch = 0 : i64, scratch_operands = 1 : i64, tpu.core_type = #tpu.core_type<tc>, window_params = [{transform_indices = @transform_0, window_bounds = array<i64: 1, 128>}, {transform_indices = @transform_1, window_bounds = array<i64: 128, 33>}, {transform_indices = @transform_2, window_bounds = array<i64: 16, 36>}, {pipeline_mode = #tpu.pipeline_mode<synchronous>, transform_indices = @transform_3, window_bounds = array<i64: 36, 32>}, {pipeline_mode = #tpu.pipeline_mode<synchronous>, transform_indices = @transform_4, window_bounds = array<i64: 32, 32>}, {pipeline_mode = #tpu.pipeline_mode<synchronous>, transform_indices = @transform_5, window_bounds = array<i64: 1, 32>}, {pipeline_mode = #tpu.pipeline_mode<synchronous>, transform_indices = @transform_6, window_bounds = array<i64: 32, 32>}, {pipeline_mode = #tpu.pipeline_mode<synchronous>, transform_indices = @transform_7, window_bounds = array<i64: 1, 32>}, {pipeline_mode = #tpu.pipeline_mode<synchronous>, transform_indices = @transform_8, window_bounds = array<i64: 32, 32>}, {pipeline_mode = #tpu.pipeline_mode<synchronous>, transform_indices = @transform_9, window_bounds = array<i64: 1, 32>}, {transform_indices = @transform_10, window_bounds = array<i64: 16, 32>}]} {
    %c0_i32 = arith.constant 0 : i32
    %0 = arith.cmpi eq, %arg1, %c0_i32 : i32
    %1 = arith.extui %0 : i1 to i32
    %c0_i32_0 = arith.constant 0 : i32
    %2 = arith.cmpi ne, %1, %c0_i32_0 : i32
    scf.if %2 {
      %cst_9 = arith.constant 0.000000e+00 : f32
      %21 = vector.broadcast %cst_9 : f32 to vector<16x33xf32>
      %c0_10 = arith.constant 0 : index
      %c0_11 = arith.constant 0 : index
      %22 = vector.load %arg13[%c0_10, %c0_11] : memref<16x33xf32, #tpu.memory_space<vmem>>, vector<16x33xf32>
      tpu.vector_store %arg13[%c0_10, %c0_11], %21 {strides = array<i32>} : memref<16x33xf32, #tpu.memory_space<vmem>>, vector<16x33xf32>,
    } else {
    }
    %c16_i32 = arith.constant 16 : i32
    %3 = arith.muli %arg0, %c16_i32 : i32
    %4 = tpu.iota {dimensions = array<i32: 0>} : vector<16x128xi32>
    %5 = vector.broadcast %3 : i32 to vector<16x128xi32>
    %6 = arith.addi %4, %5 : vector<16x128xi32>
    %c0 = arith.constant 0 : index
    %c0_1 = arith.constant 0 : index
    %7 = vector.load %arg2[%c0, %c0_1] : memref<1x128xi32, #tpu.memory_space<vmem>>, vector<1x128xi32>
    %8 = vector.broadcast %7 : vector<1x128xi32> to vector<16x128xi32>
    %9 = arith.cmpi eq, %6, %8 : vector<16x128xi32>
    %10 = arith.extui %9 : vector<16x128xi1> to vector<16x128xi32>
    %11 = arith.sitofp %10 : vector<16x128xi32> to vector<16x128xf32>
    %12 = arith.truncf %11 : vector<16x128xf32> to vector<16x128xbf16>
    %c0_2 = arith.constant 0 : index
    %c0_3 = arith.constant 0 : index
    %13 = vector.load %arg13[%c0_2, %c0_3] : memref<16x33xf32, #tpu.memory_space<vmem>>, vector<16x33xf32>
    %c0_4 = arith.constant 0 : index
    %c0_5 = arith.constant 0 : index
    %14 = vector.load %arg3[%c0_4, %c0_5] : memref<128x33xbf16, #tpu.memory_space<vmem>>, vector<128x33xbf16>
    %cst = arith.constant dense<0.000000e+00> : vector<16x33xf32>
    %15 = tpu.matmul %12, %14, %cst {dimension_numbers = #tpu.dot_dimension_numbers<[1], [0], [0], [1], [0, 0, 1, 1], [], []>} : vector<16x128xbf16>, vector<128x33xbf16>, vector<16x33xf32> -> vector<16x33xf32>
    %16 = arith.addf %13, %15 : vector<16x33xf32>
    %c0_6 = arith.constant 0 : index
    %c0_7 = arith.constant 0 : index
    %17 = vector.load %arg13[%c0_6, %c0_7] : memref<16x33xf32, #tpu.memory_space<vmem>>, vector<16x33xf32>
    tpu.vector_store %arg13[%c0_6, %c0_7], %16 {strides = array<i32>} : memref<16x33xf32, #tpu.memory_space<vmem>>, vector<16x33xf32>,
    %c1_i32 = arith.constant 1 : i32
    %18 = arith.cmpi eq, %arg1, %c1_i32 : i32
    %19 = arith.extui %18 : i1 to i32
    %c0_i32_8 = arith.constant 0 : i32
    %20 = arith.cmpi ne, %19, %c0_i32_8 : i32
    scf.if %20 {
      %c0_9 = arith.constant 0 : index
      %c0_10 = arith.constant 0 : index
      %21 = vector.load %arg13[%c0_9, %c0_10] : memref<16x33xf32, #tpu.memory_space<vmem>>, vector<16x33xf32>
      %22 = vector.extract_strided_slice %21 {offsets = [0, 0], sizes = [16, 32], strides = [1, 1]} : vector<16x33xf32> to vector<16x32xf32>
      %23 = vector.extract_strided_slice %21 {offsets = [0, 32], sizes = [16, 1], strides = [1, 1]} : vector<16x33xf32> to vector<16x1xf32>
      %cst_11 = arith.constant 1.000000e+00 : f32
      %24 = vector.broadcast %cst_11 : f32 to vector<16x1xf32>
      %25 = arith.maximumf %23, %24 : vector<16x1xf32>
      %26 = tpu.reciprocal %25 {approx = true} : vector<16x1xf32> -> vector<16x1xf32>
      %27 = vector.broadcast %26 : vector<16x1xf32> to vector<16x32xf32>
      %28 = arith.mulf %22, %27 : vector<16x32xf32>
      %29 = arith.truncf %28 : vector<16x32xf32> to vector<16x32xbf16>
      %c0_12 = arith.constant 0 : index
      %c0_13 = arith.constant 0 : index
      %30 = vector.load %arg4[%c0_12, %c0_13] : memref<16x36xbf16, #tpu.memory_space<vmem>>, vector<16x36xbf16>
      %c0_14 = arith.constant 0 : index
      %c0_15 = arith.constant 0 : index
      %31 = vector.load %arg5[%c0_14, %c0_15] : memref<36x32xbf16, #tpu.memory_space<vmem>>, vector<36x32xbf16>
      %cst_16 = arith.constant dense<0.000000e+00> : vector<16x32xf32>
      %32 = tpu.matmul %30, %31, %cst_16 {dimension_numbers = #tpu.dot_dimension_numbers<[1], [0], [0], [1], [0, 0, 1, 1], [], []>} : vector<16x36xbf16>, vector<36x32xbf16>, vector<16x32xf32> -> vector<16x32xf32>
      %c0_17 = arith.constant 0 : index
      %c0_18 = arith.constant 0 : index
      %33 = vector.load %arg6[%c0_17, %c0_18] : memref<32x32xbf16, #tpu.memory_space<vmem>>, vector<32x32xbf16>
      %cst_19 = arith.constant dense<0.000000e+00> : vector<16x32xf32>
      %34 = tpu.matmul %29, %33, %cst_19 {dimension_numbers = #tpu.dot_dimension_numbers<[1], [0], [0], [1], [0, 0, 1, 1], [], []>} : vector<16x32xbf16>, vector<32x32xbf16>, vector<16x32xf32> -> vector<16x32xf32>
      %35 = arith.addf %32, %34 : vector<16x32xf32>
      %c0_20 = arith.constant 0 : index
      %c0_21 = arith.constant 0 : index
      %36 = vector.load %arg7[%c0_20, %c0_21] : memref<1x32xf32, #tpu.memory_space<vmem>>, vector<1x32xf32>
      %37 = vector.broadcast %36 : vector<1x32xf32> to vector<16x32xf32>
      %38 = arith.addf %35, %37 : vector<16x32xf32>
      %cst_22 = arith.constant 0.000000e+00 : f32
      %39 = vector.broadcast %cst_22 : f32 to vector<16x32xf32>
      %40 = arith.subf %39, %38 : vector<16x32xf32>
      %41 = math.exp %40 : vector<16x32xf32>
      %cst_23 = arith.constant 1.000000e+00 : f32
      %42 = vector.broadcast %cst_23 : f32 to vector<16x32xf32>
      %43 = arith.addf %42, %41 : vector<16x32xf32>
      %44 = tpu.reciprocal %43 {approx = true} : vector<16x32xf32> -> vector<16x32xf32>
      %45 = arith.mulf %38, %44 : vector<16x32xf32>
      %46 = arith.truncf %45 : vector<16x32xf32> to vector<16x32xbf16>
      %c0_24 = arith.constant 0 : index
      %c0_25 = arith.constant 0 : index
      %47 = vector.load %arg8[%c0_24, %c0_25] : memref<32x32xbf16, #tpu.memory_space<vmem>>, vector<32x32xbf16>
      %cst_26 = arith.constant dense<0.000000e+00> : vector<16x32xf32>
      %48 = tpu.matmul %46, %47, %cst_26 {dimension_numbers = #tpu.dot_dimension_numbers<[1], [0], [0], [1], [0, 0, 1, 1], [], []>} : vector<16x32xbf16>, vector<32x32xbf16>, vector<16x32xf32> -> vector<16x32xf32>
      %c0_27 = arith.constant 0 : index
      %c0_28 = arith.constant 0 : index
      %49 = vector.load %arg9[%c0_27, %c0_28] : memref<1x32xf32, #tpu.memory_space<vmem>>, vector<1x32xf32>
      %50 = vector.broadcast %49 : vector<1x32xf32> to vector<16x32xf32>
      %51 = arith.addf %48, %50 : vector<16x32xf32>
      %cst_29 = arith.constant 0.000000e+00 : f32
      %52 = vector.broadcast %cst_29 : f32 to vector<16x32xf32>
      %53 = arith.subf %52, %51 : vector<16x32xf32>
      %54 = math.exp %53 : vector<16x32xf32>
      %cst_30 = arith.constant 1.000000e+00 : f32
      %55 = vector.broadcast %cst_30 : f32 to vector<16x32xf32>
      %56 = arith.addf %55, %54 : vector<16x32xf32>
      %57 = tpu.reciprocal %56 {approx = true} : vector<16x32xf32> -> vector<16x32xf32>
      %58 = arith.mulf %51, %57 : vector<16x32xf32>
      %59 = arith.truncf %58 : vector<16x32xf32> to vector<16x32xbf16>
      %c0_31 = arith.constant 0 : index
      %c0_32 = arith.constant 0 : index
      %60 = vector.load %arg10[%c0_31, %c0_32] : memref<32x32xbf16, #tpu.memory_space<vmem>>, vector<32x32xbf16>
      %cst_33 = arith.constant dense<0.000000e+00> : vector<16x32xf32>
      %61 = tpu.matmul %59, %60, %cst_33 {dimension_numbers = #tpu.dot_dimension_numbers<[1], [0], [0], [1], [0, 0, 1, 1], [], []>} : vector<16x32xbf16>, vector<32x32xbf16>, vector<16x32xf32> -> vector<16x32xf32>
      %c0_34 = arith.constant 0 : index
      %c0_35 = arith.constant 0 : index
      %62 = vector.load %arg11[%c0_34, %c0_35] : memref<1x32xf32, #tpu.memory_space<vmem>>, vector<1x32xf32>
      %63 = vector.broadcast %62 : vector<1x32xf32> to vector<16x32xf32>
      %64 = arith.addf %61, %63 : vector<16x32xf32>
      %c0_36 = arith.constant 0 : index
      %c0_37 = arith.constant 0 : index
      %65 = vector.load %arg12[%c0_36, %c0_37] : memref<16x32xf32, #tpu.memory_space<vmem>>, vector<16x32xf32>
      tpu.vector_store %arg12[%c0_36, %c0_37], %64 {strides = array<i32>} : memref<16x32xf32, #tpu.memory_space<vmem>>, vector<16x32xf32>,
    } else {
    }
    return
  }
  func.func @transform_0(%arg0: i32, %arg1: i32) -> (i32, i32) {
    %c0_i32 = arith.constant 0 : i32
    %c0_i32_0 = arith.constant 0 : i32
    return %c0_i32, %arg1 : i32, i32
  }
  func.func @transform_1(%arg0: i32, %arg1: i32) -> (i32, i32) {
    %c0_i32 = arith.constant 0 : i32
    %c0_i32_0 = arith.constant 0 : i32
    return %arg1, %c0_i32 : i32, i32
  }
  func.func @transform_2(%arg0: i32, %arg1: i32) -> (i32, i32) {
    %c0_i32 = arith.constant 0 : i32
    %c0_i32_0 = arith.constant 0 : i32
    return %arg0, %c0_i32 : i32, i32
  }
  func.func @transform_3(%arg0: i32, %arg1: i32) -> (i32, i32) {
    %c0_i32 = arith.constant 0 : i32
    %c0_i32_0 = arith.constant 0 : i32
    %c0_i32_1 = arith.constant 0 : i32
    return %c0_i32, %c0_i32_0 : i32, i32
  }
  func.func @transform_4(%arg0: i32, %arg1: i32) -> (i32, i32) {
    %c0_i32 = arith.constant 0 : i32
    %c0_i32_0 = arith.constant 0 : i32
    %c0_i32_1 = arith.constant 0 : i32
    return %c0_i32, %c0_i32_0 : i32, i32
  }
  func.func @transform_5(%arg0: i32, %arg1: i32) -> (i32, i32) {
    %c0_i32 = arith.constant 0 : i32
    %c0_i32_0 = arith.constant 0 : i32
    %c0_i32_1 = arith.constant 0 : i32
    return %c0_i32, %c0_i32_0 : i32, i32
  }
  func.func @transform_6(%arg0: i32, %arg1: i32) -> (i32, i32) {
    %c0_i32 = arith.constant 0 : i32
    %c0_i32_0 = arith.constant 0 : i32
    %c0_i32_1 = arith.constant 0 : i32
    return %c0_i32, %c0_i32_0 : i32, i32
  }
  func.func @transform_7(%arg0: i32, %arg1: i32) -> (i32, i32) {
    %c0_i32 = arith.constant 0 : i32
    %c0_i32_0 = arith.constant 0 : i32
    %c0_i32_1 = arith.constant 0 : i32
    return %c0_i32, %c0_i32_0 : i32, i32
  }
  func.func @transform_8(%arg0: i32, %arg1: i32) -> (i32, i32) {
    %c0_i32 = arith.constant 0 : i32
    %c0_i32_0 = arith.constant 0 : i32
    %c0_i32_1 = arith.constant 0 : i32
    return %c0_i32, %c0_i32_0 : i32, i32
  }
  func.func @transform_9(%arg0: i32, %arg1: i32) -> (i32, i32) {
    %c0_i32 = arith.constant 0 : i32
    %c0_i32_0 = arith.constant 0 : i32
    %c0_i32_1 = arith.constant 0 : i32
    return %c0_i32, %c0_i32_0 : i32, i32
  }
  func.func @transform_10(%arg0: i32, %arg1: i32) -> (i32, i32) {
    %c0_i32 = arith.constant 0 : i32
    %c0_i32_0 = arith.constant 0 : i32
    return %arg0, %c0_i32 : i32, i32
  }
}

</mosaic_0001>

<bundles_post_ra>
// kernel: tpu_custom_call.1
= control target key start
LH: loop header
LB: loop body
LE: loop exit
PB: predicated region body
PF: predicated region fallthrough
CT: control target
= control target key end

     0   :  { %s1280_s13 = smov 0   ;;  %s1282_s14 = smov 0   ;;  %s1431_s0 = inlined_call_operand.vmem [shape: s32[1,256], index: 0, kind: input, shape index: {}]   ;;  %s1432_s1 = inlined_call_operand.vmem [shape: bf16[256,33], index: 1, kind: input, shape index: {}]   ;;  %s1433_s2 = inlined_call_operand.vmem [shape: bf16[48,36], index: 2, kind: input, shape index: {}]   ;;  %s1434_s3 = inlined_call_operand.vmem [shape: bf16[36,32], index: 3, kind: input, shape index: {}]   ;;  %s1435_s4 = inlined_call_operand.vmem [shape: bf16[32,32], index: 4, kind: input, shape index: {}]   ;;  %s1436_s5 = inlined_call_operand.vmem [shape: f32[1,32], index: 5, kind: input, shape index: {}]   ;;  %s1437_s6 = inlined_call_operand.vmem [shape: bf16[32,32], index: 6, kind: input, shape index: {}]   ;;  %s1438_s7 = inlined_call_operand.vmem [shape: f32[1,32], index: 7, kind: input, shape index: {}]   ;;  %s1439_s8 = inlined_call_operand.vmem [shape: bf16[32,32], index: 8, kind: input, shape index: {}]   ;;  %s1440_s9 = inlined_call_operand.vmem [shape: f32[1,32], index: 9, kind: input, shape index: {}]   ;;  %s1441_s10 = inlined_call_operand.vmem [shape: f32[48,32], index: 10, kind: output, shape index: {}]  }
   0x1   :  { %s1284_s15 = smov 0   ;;  %s1286_s16 = smov 0  }
   0x2   :  { %s1288_s17 = smov 0  }
   0x3 LB: > { %1444 = sst [smem:[#allocation3_spill]] %s1208_s15  ;;  %s29_s18 = sadd.s32 1, %s1208_s15  ;;  %s1216_s17 = sphi %s1288_s17, %s20_s17   ;;  %s1212_s16 = sphi %s1286_s16, %s1451_s16   ;;  %s1208_s15 = sphi %s1284_s15, %s1450_s15   ;;  %s1204_s14 = sphi %s1282_s14, %s1449_s14   ;;  %s1200_s13 = sphi %s1280_s13, %s1448_s13  }
   0x4   : > { %1445 = sst [smem:[#allocation4_spill]] %s1212_s16  ;;  %s32_s19 = sadd.s32 1, %s1212_s16 }
   0x5   : > { %p30_p0 = scmp.ge.s32.totalorder %s29_s18, 2  ;;  %p974_p1 = scmp.ge.s32.totalorder %s1216_s17, 1 }
   0x6   : > { %p344_p2 = scmp.lt.s32.totalorder %s1216_s17, 7 }
   0x7   : > { %s1453_s18 = smov (%p30_p0, %s29_s18), 0  ;;  %s1455_s19 = smov (!%p30_p0, %s32_s19), %s1212_s16 }
   0x8   : > { %1446 = sst [smem:[#allocation5_spill]] %s1453_s18  ;;  %p345_p3 = pnand %p974_p1, %p344_p2 }
   0x9   : > { %p34_p4 = scmp.ge.s32.totalorder %s1455_s19, 3  ;;  %p390_p5 = scmp.lt.s32.totalorder (!%p345_p3), %s1200_s13, 1 }
   0xa   : > { %348 = sbr.rel (%p345_p3) target bundleno = 1087 (0x43f), region = 60  ;;  %s975_s20 = sshll.u32 (!%p345_p3), %s1200_s13, 4 }
   0xb   : > { %s1457_s19 = smov (%p34_p4, %s1455_s19), 0  ;;  %p394_p6 = scmp.lt.s32.totalorder (!%p345_p3), %s975_s20, 31 }
   0xc   : > { %1447 = sst [smem:[#allocation6_spill]] %s1457_s19  ;;  %s977_s21 = sshll.u32 (!%p345_p3), %s1204_s14, 1 }
   0xd   : > { %p400_p7 = scmp.lt.s32.totalorder (!%p345_p3), %s977_s21, 5  ;;  %p981_p8 = scmp.ne.s32.totalorder (!%p345_p3), %s1200_s13, 0 }
   0xf   : > { %s1318_s22 = scalar_select %p390_p5, %s1200_s13, 1 }
  0x10   : > { %s1459_s20 = smov (!%p394_p6, %s975_s20), 31  ;;  %s1461_s21 = smov (!%p400_p7, %s977_s21), 5 }
  0x11   : > { %s392_s25 = scalar_lea.vmem %s1431_s0, %s1318_s22  ;;  %s976_s26 = sshll.u32 %s1459_s20, 2 }
  0x12   : > { %s1327_s29 = scalar_lea.vmem %s1432_s1, %s976_s26  ;;  %s978_s30 = sshll.u32 %s1461_s21, 2 }
  0x13   : > { %s980_s11 = sshll.u32 %s1461_s21, 3  ;;  %s1332_s18 = scalar_lea.vmem %s1433_s2, %s978_s30 }
  0x14   : > { %s1337_s23 = scalar_lea.vmem %s1441_s10, %s980_s11  ;;  %415 = sbr.rel (%p981_p8) target bundleno = 27 (0x1b), region = 64 }
  0x19   : > { %vm416_vm0 = vcmask 269312   ;;  %v1218_v0 = vmov 0.0  }
  0x1a   : > { %417 = vst.msk [vmem:[#allocation2] sm:$0xff] %vm416_vm0, %v1218_v0  ;;  %418 = vst.msk [vmem:[#allocation2 + $0x8] sm:$0xff] %vm416_vm0, %v1218_v0 }
  0x1b PF: > { %v1139_v1 = vld [vmem:[%s1327_s29 + $0x38] sm:$0xff]   ;;  %v1219_v2 = vmov 0.0   ;;  %v1140_v3 = vld [vmem:[%s1327_s29 + $0x30] sm:$0xff]   ;;  %vm1220_vm1 = vmmov 0   ;;  %v1141_v4 = vld [vmem:[%s1327_s29 + $0x28] sm:$0xff]   ;;  %v420_v6 = vlaneseq  ;;  %s982_s15 = sshll.u32 %s1204_s14, 4 }
  0x1c   : > { %1038 = vmatprep.subr.bf16.mxu0 %v1219_v2  ;;  %1054 = vmatprep.mubr.msk.bf16.mxu0 %vm1220_vm1, %v1219_v2  ;;  %v1142_v5 = vld [vmem:[%s1327_s29 + $0x20] sm:$0xff]   ;;  %v1143_v7 = vld [vmem:[%s1327_s29 + $0x18] sm:$0xff]   ;;  %v1144_v9 = vld [vmem:[%s1327_s29 + $0x10] sm:$0xff]   ;;  %v423_v11 = vstv %s982_s15  ;;  %v1221_v17 = vmov 1.0|1.0   ;;  %vm547_vm5 = vcmask 269312  }
  0x1d   : > { %1039 = vmatpush3.bf16.msra.mxu0 %v1139_v1  ;;  %v421_v8 = vshrl.u32 %v420_v6, 7  ;;  %v1145_v12 = vld [vmem:[%s1327_s29 + $0x8] sm:$0xff]   ;;  %v983_v15 = vld [vmem:[%s392_s25] ss:$0 sm:$0xff]  ;;  %p996_p9 = scmp.ne.s32.totalorder %s1200_s13, 1 }
  0x1e   : > { %1040 = vmatprep.subr.bf16.mxu0 %v1219_v2  ;;  %v1146_v16 = vld [vmem:[%s1327_s29] sm:$0xff]  }
  0x1f   : > { %v422_v10 = vadd.s32 8, %v421_v8  ;;  %v424_v13 = vadd.s32 %v423_v11, %v421_v8 }
  0x21   : > { %1041 = vmatpush3.bf16.msra.mxu0 %v1140_v3  ;;  %v425_v14 = vadd.s32 %v423_v11, %v422_v10  ;;  %vm431_vm2 = vcmp.eq.s32.totalorder %v424_v13, %v983_v15  ;;  %v438_v18 = vld [vmem:[#allocation2] sm:$0xff]  ;;  %v439_v22 = vld [vmem:[#allocation2 + $0x8] sm:$0xff] }
  0x22   : > { %1042 = vmatprep.subr.bf16.mxu0 %v1219_v2 }
  0x23   : > { %vm432_vm3 = vcmp.eq.s32.totalorder %v425_v14, %v983_v15 }
  0x24   : > { %vm994_vm4 = vmpackc.low %vm432_vm3, %vm431_vm2 }
  0x25   : > { %1043 = vmatpush3.bf16.msra.mxu0 %v1141_v4 }
  0x26   : > { %1044 = vmatprep.subr.bf16.mxu0 %v1219_v2 }
  0x29   : > { %1045 = vmatpush3.bf16.msra.mxu0 %v1142_v5 }
  0x2a   : > { %1046 = vmatprep.subr.bf16.mxu0 %v1219_v2 }
  0x2d   : > { %1047 = vmatpush3.bf16.msra.mxu0 %v1143_v7 }
  0x2e   : > { %1048 = vmatprep.subr.bf16.mxu0 %v1219_v2 }
  0x31   : > { %1049 = vmatpush3.bf16.msra.mxu0 %v1144_v9 }
  0x32   : > { %1050 = vmatprep.subr.bf16.mxu0 %v1219_v2 }
  0x35   : > { %1051 = vmatpush3.bf16.msra.mxu0 %v1145_v12 }
  0x36   : > { %1052 = vmatprep.subr.bf16.mxu0 %v1219_v2 }
  0x39   : > { %1053 = vmatpush3.bf16.msra.mxu0 %v1146_v16 }
  0x3c   : > { %1055 = vmatmul.mubr.msk.bf16.vlgmr.msra.gmra.mxu0 %vm994_vm4, %v1221_v17 }
  0xfc   : > { %v538_v19 = vpop.f32.mrf.mxu0 }
  0xfd   : > { %v545_v20 = vadd.f32 %v538_v19, %v438_v18 }
  0xfe   : > { %v1056_v21 = vpop.f32.mrf.mxu0 }
  0xff   : > { %548 = vst.msk [vmem:[#allocation2] sm:$0xff] %vm547_vm5, %v545_v20  ;;  %553 = sbr.rel (%p996_p9) target bundleno = 1087 (0x43f), region = 68 }
 0x100   : > { %v541_v23 = vpop.f32.mrf.mxu0 }
 0x101   : > { %v546_v24 = vadd.f32 %v541_v23, %v439_v22 }
 0x102   : > { %v1057_v25 = vpop.f32.mrf.mxu0 }
 0x103   : > { %549 = vst.msk [vmem:[#allocation2 + $0x8] sm:$0xff] %vm547_vm5, %v546_v24 }
 0x104   : > { %v1222_v28 = vmov 32   ;;  %v1223_v31 = vmov 0.0   ;;  %v1148_v32 = vld [vmem:[%s1434_s3 + $0x10] ss:$0 sps:$4 sm:$0x33]   ;;  %vm665_vm6 = vcmask 1041408  }
 0x105   : > { %1147 = vset.pattern.permute.xlu0 %v1222_v28  ;;  %1066 = vmatprep.subr.bf16.mxu1 %v1223_v31  ;;  %v667_v33 = vsel %vm665_vm6, %v1148_v32, 0  ;;  %v1149_v34 = vld [vmem:[%s1434_s3 + $0x8] sm:$0xff]   ;;  %v1150_v35 = vld [vmem:[%s1434_s3] sm:$0xff]   ;;  %vm661_vm7 = vcmask 293888   ;;  %vm1224_vm8 = vmmov 0   ;;  %vm596_vm9 = vcmask 261120  }
 0x106   : > { %v554_v26 = vld [vmem:[#allocation2] sm:$0xff]  ;;  %1058 = vmatprep.subr.bf16.mxu0 %v1223_v31  ;;  %1067 = vmatpush3.bf16.msra.mxu1 %v667_v33  ;;  %v1151_v36 = vld [vmem:[%s1435_s4 + $0x8] sm:$0xff]  }
 0x107   : > { %v556_v29 = vmax.f32 %v554_v26, 1.0  ;;  %1068 = vmatprep.subr.bf16.mxu1 %v1223_v31  ;;  %v1152_v37 = vld [vmem:[%s1332_s18] sm:$0xff]   ;;  %1059 = vmatpush3.bf16.msra.mxu0 %v1151_v36  ;;  %v1154_v50 = vld [vmem:[%s1437_s6 + $0x8] sm:$0xff]  }
 0x108   : > { %1072 = vmatprep.mubr.msk.bf16.mxu1 %vm1224_vm8, %v1223_v31  ;;  %1060 = vmatprep.subr.bf16.mxu0 %v1223_v31  ;;  %v1153_v39 = vld [vmem:[%s1435_s4] sm:$0xff]   ;;  %v1156_v10 = vld [vmem:[%s1439_s8 + $0x8] sm:$0xff]  }
 0x109   : > { %1158 = vrcp.f32 %v556_v29  ;;  %1062 = vmatprep.mubr.msk.bf16.mxu0 %vm1224_vm8, %v1223_v31  ;;  %v1155_v51 = vld [vmem:[%s1437_s6] sm:$0xff]  }
 0x10a   : > { %v555_v27 = vld [vmem:[#allocation2 + $0x8] sm:$0xff]  ;;  %1069 = vmatpush3.bf16.msra.mxu1 %v1149_v34  ;;  %v1005_v53 = vld [vmem:[%s1436_s5] ss:$0 sm:$0xff] }
 0x10b   : > { %v557_v30 = vmax.f32 %v555_v27, 1.0  ;;  %1070 = vmatprep.subr.bf16.mxu1 %v1223_v31  ;;  %1061 = vmatpush3.bf16.msra.mxu0 %v1153_v39  ;;  %v1157_v11 = vld [vmem:[%s1439_s8] sm:$0xff]  }
 0x10c   : > { %1076 = vmatprep.subr.bf16.mxu0 %v1223_v31  ;;  %v1006_v12 = vld [vmem:[%s1438_s7] ss:$0 sm:$0xff] }
 0x10d   : > { %1160 = vrcp.f32 %v557_v30  ;;  %v1010_v32 = vld [vmem:[%s1440_s9] ss:$0 sm:$0xff] }
 0x10e   : > { %1071 = vmatpush3.bf16.msra.mxu1 %v1150_v35 }
 0x10f   : > { %1084 = vmatprep.subr.bf16.mxu1 %v1223_v31 }
 0x111   : > { %1073 = vmatmul.mubr.msk.bf16.vlgmr.msra.gmra.mxu1 %vm661_vm7, %v1152_v37 }
 0x112   : > { %1088 = vmatprep.mubr.msk.bf16.mxu1 %vm1224_vm8, %v1223_v31  ;;  %1085 = vmatpush3.bf16.msra.mxu1 %v1156_v10 }
 0x113   : > { %1086 = vmatprep.subr.bf16.mxu1 %v1223_v31 }
 0x116   : > { %v1159_v38 = vpop.eup %1158  ;;  %1087 = vmatpush3.bf16.msra.mxu1 %v1157_v11 }
 0x117   : > { %562 = vperm.xlu0 %1147, %v1159_v38  }
 0x11a   : > { %v1161_v40 = vpop.eup %1160 }
 0x11b   : > { %567 = vperm.xlu0 %1147, %v1161_v40  }
 0x192   : > { %v563_v41 = vpop.permute.xlu0 %562 }
 0x193   : > { %v570_v43 = vmul.f32 %v563_v41, %v554_v26 }
 0x196   : > { %v568_v42 = vpop.permute.xlu0 %567 }
 0x197   : > { %v571_v44 = vmul.f32 %v568_v42, %v555_v27 }
 0x199   : > { %v572_v45 = vpack.c.bf16 %v571_v44, %v570_v43 }
 0x19b   : > { %1063 = vmatmul.mubr.msk.bf16.vlgmr.msra.gmra.mxu0 %vm596_vm9, %v572_v45 }
 0x19c   : > { %1080 = vmatprep.mubr.msk.bf16.mxu0 %vm1224_vm8, %v1223_v31  ;;  %1077 = vmatpush3.bf16.msra.mxu0 %v1154_v50 }
 0x19d   : > { %1078 = vmatprep.subr.bf16.mxu0 %v1223_v31 }
 0x1a0   : > { %1079 = vmatpush3.bf16.msra.mxu0 %v1155_v51 }
 0x1d1   : > { %v703_v46 = vpop.f32.mrf.mxu1 }
 0x1d3   : > { %v1074_v47 = vpop.f32.mrf.mxu1 }
 0x1d5   : > { %v706_v48 = vpop.f32.mrf.mxu1 }
 0x1d7   : > { %v1075_v49 = vpop.f32.mrf.mxu1 }
 0x25b   : > { %v634_v52 = vpop.f32.mrf.mxu0 }
 0x25c   : > { %v704_v54 = vadd.f32 %v703_v46, %v634_v52 }
 0x25d   : > { %v1064_v55 = vpop.f32.mrf.mxu0 }
 0x25e   : > { %v717_v56 = vadd.f32 %v1005_v53, %v704_v54 }
 0x25f   : > { %v637_v57 = vpop.f32.mrf.mxu0 }
 0x260   : > { %v719_v58 = vsub.f32 0.0, %v717_v56  ;;  %v707_v59 = vadd.f32 %v706_v48, %v637_v57 }
 0x261   : > { %v1065_v60 = vpop.f32.mrf.mxu0 }
 0x262   : > { %v721_v61 = vmul.f32 1.442695, %v719_v58  ;;  %v718_v62 = vadd.f32 %v1005_v53, %v707_v59 }
 0x264   : > { %1162 = vpow2.f32 %v721_v61  ;;  %v720_v63 = vsub.f32 0.0, %v718_v62 }
 0x266   : > { %v723_v0 = vmul.f32 1.442695, %v720_v63 }
 0x268   : > { %1164 = vpow2.f32 %v723_v0 }
 0x271   : > { %v1163_v1 = vpop.eup %1162 }
 0x272   : > { %v725_v2 = vadd.f32 1.0, %v1163_v1 }
 0x274   : > { %1166 = vrcp.f32 %v725_v2 }
 0x275   : > { %v1165_v3 = vpop.eup %1164 }
 0x276   : > { %v726_v4 = vadd.f32 1.0, %v1165_v3 }
 0x278   : > { %1168 = vrcp.f32 %v726_v4 }
 0x281   : > { %v1167_v5 = vpop.eup %1166 }
 0x282   : > { %v729_v7 = vmul.f32 %v1167_v5, %v717_v56 }
 0x285   : > { %v1169_v6 = vpop.eup %1168 }
 0x286   : > { %v730_v8 = vmul.f32 %v1169_v6, %v718_v62 }
 0x288   : > { %v731_v9 = vpack.c.bf16 %v730_v8, %v729_v7 }
 0x28a   : > { %1081 = vmatmul.mubr.msk.bf16.vlgmr.msra.gmra.mxu0 %vm596_vm9, %v731_v9 }
 0x34a   : > { %v792_v13 = vpop.f32.mrf.mxu0 }
 0x34b   : > { %v793_v14 = vadd.f32 %v1006_v12, %v792_v13 }
 0x34c   : > { %v1082_v15 = vpop.f32.mrf.mxu0 }
 0x34d   : > { %v799_v16 = vsub.f32 0.0, %v793_v14 }
 0x34e   : > { %v795_v17 = vpop.f32.mrf.mxu0 }
 0x34f   : > { %v801_v18 = vmul.f32 1.442695, %v799_v16  ;;  %v796_v19 = vadd.f32 %v1006_v12, %v795_v17 }
 0x350   : > { %v1083_v20 = vpop.f32.mrf.mxu0 }
 0x351   : > { %1170 = vpow2.f32 %v801_v18  ;;  %v800_v21 = vsub.f32 0.0, %v796_v19 }
 0x353   : > { %v803_v22 = vmul.f32 1.442695, %v800_v21 }
 0x355   : > { %1172 = vpow2.f32 %v803_v22 }
 0x35e   : > { %v1171_v23 = vpop.eup %1170 }
 0x35f   : > { %v805_v24 = vadd.f32 1.0, %v1171_v23 }
 0x361   : > { %1174 = vrcp.f32 %v805_v24 }
 0x362   : > { %v1173_v25 = vpop.eup %1172 }
 0x363   : > { %v806_v26 = vadd.f32 1.0, %v1173_v25 }
 0x365   : > { %1176 = vrcp.f32 %v806_v26 }
 0x36e   : > { %v1175_v27 = vpop.eup %1174 }
 0x36f   : > { %v809_v29 = vmul.f32 %v1175_v27, %v793_v14 }
 0x372   : > { %v1177_v28 = vpop.eup %1176 }
 0x373   : > { %v810_v30 = vmul.f32 %v1177_v28, %v796_v19 }
 0x375   : > { %v811_v31 = vpack.c.bf16 %v810_v30, %v809_v29 }
 0x377   : > { %1089 = vmatmul.mubr.msk.bf16.vlgmr.msra.gmra.mxu1 %vm596_vm9, %v811_v31 }
 0x437   : > { %v872_v33 = vpop.f32.mrf.mxu1 }
 0x438   : > { %v873_v34 = vadd.f32 %v1010_v32, %v872_v33 }
 0x439   : > { %v1090_v35 = vpop.f32.mrf.mxu1 }
 0x43a   : > { %879 = vst.msk [vmem:[%s1337_s23] sm:$0xff] %vm596_vm9, %v873_v34 }
 0x43b   : > { %v875_v36 = vpop.f32.mrf.mxu1 }
 0x43c   : > { %v876_v37 = vadd.f32 %v1010_v32, %v875_v36 }
 0x43d   : > { %v1091_v38 = vpop.f32.mrf.mxu1 }
 0x43e   : > { %880 = vst.msk [vmem:[%s1337_s23 + $0x8] sm:$0xff] %vm596_vm9, %v876_v37 }
 0x43f PF: > { %s20_s17 = sadd.s32 1, %s1216_s17   ;;  %s1448_s13 = sld [smem:[#allocation3_spill]] }
 0x440   : > { %p17_p10 = scmp.ge.s32.totalorder %s20_s17, 8   ;;  %s1449_s14 = sld [smem:[#allocation4_spill]] }
 0x441   : > { %s1450_s15 = sld [smem:[#allocation5_spill]] }
 0x442   : > { %s1451_s16 = sld [smem:[#allocation6_spill]]  ;;  %19 = sbr.rel (!%p17_p10) target bundleno = 3 (0x3), region = 104 }

</bundles_post_ra>
